<compile_context>
chip_gen: v5e
topology: v5e:2x2
jax: 0.10.0
libtpu: 0.0.40
codegen_flags: <defaults>
</compile_context>

<pallas_src>
import functools

import jax
import jax.numpy as jnp
from jax.experimental import pallas as pl
from jax.experimental.pallas import tpu as pltpu


def _round_up(x, m):
    return ((x + m - 1) // m) * m


def _tpu_defaults():
    """Returns (vmem_capacity_bytes, tensorcores_per_chip, default_tm, default_tn)."""
    kind = ""
    try:
        kind = jax.devices()[0].device_kind.lower()
    except Exception:
        pass
    if "v5" in kind:               # v5e/v5p: 128 MiB VMEM, 1 TC, 128x128 MXUs -> big tn, tm=256
        return 128 << 20, 1, 256, 1024
    if "v6" in kind:               # v6e: 128 MiB VMEM, 1 TC -> big token tiles when streaming
        return 128 << 20, 1, 512, 512
    if "7" in kind:                # v7x: 64 MiB VMEM per TC, 2 TCs
        return 64 << 20, 2, 384, 512
    return 64 << 20, 1, 256, 512   # unknown: conservative


def _layernorm_f32(x, ln_w, ln_b, *, eps, true_dim, padded):
    """x: (rows, D_pad) f32. If padded, lanes >= true_dim are zero in x / ln_w / ln_b."""
    inv_d = jnp.float32(1.0 / true_dim)
    mean = jnp.sum(x, axis=-1, keepdims=True) * inv_d
    centered = x - mean
    if padded:
        lane = jax.lax.broadcasted_iota(jnp.int32, x.shape, dimension=1)
        centered = centered * (lane < true_dim).astype(jnp.float32)
    var = jnp.sum(centered * centered, axis=-1, keepdims=True) * inv_d
    inv = jax.lax.rsqrt(var + eps)
    return centered * inv * ln_w + ln_b


def _gelu_exact(h):
    # torch.nn.GELU() default (erf-based).
    return 0.5 * h * (1.0 + jax.lax.erf(h * 0.7071067811865476))


# ---------------------------------------------------------------------------
# Fast path: w1/w2 stay resident in VMEM; grid = (token tiles,)
# ---------------------------------------------------------------------------
def _ffn_kernel_resident(x_ref, ln_w_ref, ln_b_ref, w1_ref, b1_ref, w2_ref, b2_ref,
                         o_ref, *, eps, true_dim, padded):
    x = x_ref[...].astype(jnp.float32)
    y = _layernorm_f32(x, ln_w_ref[...].astype(jnp.float32),
                       ln_b_ref[...].astype(jnp.float32),
                       eps=eps, true_dim=true_dim, padded=padded)
    h = jnp.dot(y.astype(jnp.bfloat16), w1_ref[...],
                preferred_element_type=jnp.float32)
    h = _gelu_exact(h + b1_ref[...].astype(jnp.float32))
    # TODO(synk): Dropout is identity in eval mode; training-mode dropout would need
    # pltpu.prng_seed / pltpu.stateful_bernoulli.
    out = jnp.dot(h.astype(jnp.bfloat16), w2_ref[...],
                  preferred_element_type=jnp.float32)
    o_ref[...] = (out + b2_ref[...].astype(jnp.float32)).astype(o_ref.dtype)


# ---------------------------------------------------------------------------
# Streaming path: hidden axis tiled; grid = (token tiles [parallel], hidden chunks [arbitrary])
# ---------------------------------------------------------------------------
def _ffn_kernel_stream(x_ref, ln_w_ref, ln_b_ref, w1_ref, b1_ref, w2_ref, b2_ref,
                       o_ref, y_scratch, *maybe_acc, eps, true_dim, padded):
    # If no scratch accumulator was allocated, accumulate directly into the (f32) output tile,
    # which is resident across the hidden axis.
    acc_ref = maybe_acc[0] if maybe_acc else o_ref
    j = pl.program_id(1)

    @pl.when(j == 0)
    def _():
        x = x_ref[...].astype(jnp.float32)
        y = _layernorm_f32(x, ln_w_ref[...].astype(jnp.float32),
                           ln_b_ref[...].astype(jnp.float32),
                           eps=eps, true_dim=true_dim, padded=padded)
        y_scratch[...] = y.astype(y_scratch.dtype)

    h = jnp.dot(y_scratch[...], w1_ref[...], preferred_element_type=jnp.float32)
    h = _gelu_exact(h + b1_ref[...].astype(jnp.float32))
    partial = jnp.dot(h.astype(jnp.bfloat16), w2_ref[...],
                      preferred_element_type=jnp.float32)

    # No zero-init pass: first chunk writes directly, later chunks accumulate.
    @pl.when(j == 0)
    def _():
        acc_ref[...] = partial.astype(acc_ref.dtype)

    @pl.when(j > 0)
    def _():
        acc_ref[...] += partial.astype(acc_ref.dtype)

    @pl.when(j == pl.num_programs(1) - 1)
    def _():
        o_ref[...] = (acc_ref[...].astype(jnp.float32)
                      + b2_ref[...].astype(jnp.float32)).astype(o_ref.dtype)


def feed_forward(x, params, *, eps=1e-5):
    """x: (B, N, dim). Returns (B, N, dim). Eval-mode FeedForward."""
    B, N, dim = x.shape
    T = B * N
    hidden = params["w1"].shape[1]
    out_dtype = x.dtype
    out_isize = jnp.dtype(out_dtype).itemsize

    vmem_cap, n_cores, tm_dflt, tn_dflt = _tpu_defaults()
    # v7x: 64 MiB physical -> leave headroom (56 MiB). v5e/v6e: 128 MiB -> allow ~100 MiB.
    budget = min(vmem_cap - (8 << 20), 100 << 20)

    # Lane-dense padding of feature axes (zero padding is exact: gelu(0)=0, padded w2 rows are 0).
    D_pad = max(_round_up(dim, 128), 128)
    H_pad = max(_round_up(hidden, 128), 128)
    dim_padded = (D_pad != dim)

    # ---- token tiling ----
    T8 = _round_up(T, 8)

    def pick_tm(target):
        if T8 <= target:
            if n_cores >= 2 and T8 >= 256:
                # v7x: give both TensorCores a token tile.
                return _round_up(-(-T8 // n_cores), 8)
            return T8
        for t in (target, 256, 128):
            if t > target:
                continue
            padded_rows = _round_up(T8, t)
            if (padded_rows - T8) * 8 <= padded_rows:   # <= 12.5 % padded rows
                return t
        return 128

    def tm_candidates(t0):
        cands = [t0]
        t = t0
        while t > 128:
            t = max(t // 2, 128)
            cands.append(t)
        return cands

    acc_in_out = (jnp.dtype(out_dtype) == jnp.dtype(jnp.float32))

    def resident_vmem(tm_):
        b = 2 * (2 * D_pad * H_pad * 2)              # bf16 w1+w2 (double-buffered, conservative)
        b += 2 * tm_ * D_pad * 2                     # x tile (bf16, x2)
        b += 2 * tm_ * D_pad * out_isize             # out tile (x2)
        b += 2 * (H_pad * 4 + 3 * D_pad * 4)         # biases / LN params
        b += tm_ * H_pad * 6                         # hidden intermediate (f32 + bf16)
        b += tm_ * D_pad * 8                         # LN temporaries / normalized activations
        return b

    def stream_vmem(tm_, tn_):
        b = 2 * tm_ * D_pad * 2                      # x tile (bf16, x2)
        b += 2 * tm_ * D_pad * out_isize             # out tile (x2)
        b += 2 * D_pad * tn_ * 2 + 2 * tn_ * D_pad * 2   # w1 / w2 chunks (bf16, x2)
        b += 2 * (tn_ * 4 + 3 * D_pad * 4)           # b1 chunk / b2 / LN params
        b += tm_ * D_pad * 2                         # y scratch (bf16)
        if not acc_in_out:
            b += tm_ * D_pad * 4                     # f32 accumulator scratch
        b += tm_ * tn_ * 6                           # hidden intermediate (f32 + bf16)
        b += tm_ * D_pad * 4                         # LN temporaries at j == 0
        return b

    # ---- choose path ----
    tm = pick_tm(tm_dflt)
    use_resident = False
    for cand in tm_candidates(tm):
        if resident_vmem(cand) <= budget:
            tm, use_resident = cand, True
            break

    if use_resident:
        tn = H_pad
        H_run = H_pad
        H_chunks = 1
    else:
        tn = min(tn_dflt, H_pad)
        while stream_vmem(tm, tn) > budget and tn > 128:
            tn = max(((tn // 2) // 128) * 128, 128)
        while stream_vmem(tm, tn) > budget and tm > 128:
            tm = max(tm // 2, 128)
        H_chunks = pl.cdiv(H_pad, tn)
        H_run = H_chunks * tn

    T_pad = _round_up(T8, tm)
    nt = T_pad // tm

    # ---- prepare padded operands (bf16 activations/weights, f32 biases & LN params) ----
    x2d = x.reshape(T, dim).astype(jnp.bfloat16)
    if T_pad != T or D_pad != dim:
        x2d = jnp.pad(x2d, ((0, T_pad - T), (0, D_pad - dim)))

    w1 = params["w1"].astype(jnp.bfloat16)
    w2 = params["w2"].astype(jnp.bfloat16)
    b1 = params["b1"].reshape(1, -1).astype(jnp.float32)
    b2 = params["b2"].reshape(1, -1).astype(jnp.float32)
    ln_w = params["ln_w"].reshape(1, -1).astype(jnp.float32)
    ln_b = params["ln_b"].reshape(1, -1).astype(jnp.float32)

    pad_d = D_pad - dim
    pad_h = H_run - hidden
    if pad_d or pad_h:
        w1 = jnp.pad(w1, ((0, pad_d), (0, pad_h)))
        b1 = jnp.pad(b1, ((0, 0), (0, pad_h)))
        w2 = jnp.pad(w2, ((0, pad_h), (0, pad_d)))
        b2 = jnp.pad(b2, ((0, 0), (0, pad_d)))
        ln_w = jnp.pad(ln_w, ((0, 0), (0, pad_d)))
        ln_b = jnp.pad(ln_b, ((0, 0), (0, pad_d)))

    # ---- cost estimate (reflects weight re-streaming when not resident) ----
    weight_bytes = (w1.size + w2.size) * 2
    weight_passes = 1 if use_resident else nt
    cost = pl.CostEstimate(
        flops=int(4 * T_pad * D_pad * H_run),
        transcendentals=int(T_pad * H_run),
        bytes_accessed=int(x2d.size * 2 + T_pad * D_pad * out_isize
                           + weight_bytes * weight_passes
                           + (b1.size + b2.size + ln_w.size + ln_b.size) * 4),
    )
    vmem_limit = int(budget)

    if use_resident:
        kernel = functools.partial(_ffn_kernel_resident, eps=eps, true_dim=dim,
                                   padded=dim_padded)
        grid = (nt,)
        in_specs = [
            pl.BlockSpec((tm, D_pad), lambda i: (i, 0)),       # x tile
            pl.BlockSpec((1, D_pad), lambda i: (0, 0)),        # ln weight
            pl.BlockSpec((1, D_pad), lambda i: (0, 0)),        # ln bias
            pl.BlockSpec((D_pad, H_run), lambda i: (0, 0)),    # w1 (resident)
            pl.BlockSpec((1, H_run), lambda i: (0, 0)),        # b1
            pl.BlockSpec((H_run, D_pad), lambda i: (0, 0)),    # w2 (resident)
            pl.BlockSpec((1, D_pad), lambda i: (0, 0)),        # b2
        ]
        out_specs = pl.BlockSpec((tm, D_pad), lambda i: (i, 0))
        scratch = []
        dims_sem = ("parallel",)
    else:
        kernel = functools.partial(_ffn_kernel_stream, eps=eps, true_dim=dim,
                                   padded=dim_padded)
        grid = (nt, H_chunks)
        in_specs = [
            pl.BlockSpec((tm, D_pad), lambda i, j: (i, 0)),    # x tile (reused across j)
            pl.BlockSpec((1, D_pad), lambda i, j: (0, 0)),     # ln weight
            pl.BlockSpec((1, D_pad), lambda i, j: (0, 0)),     # ln bias
            pl.BlockSpec((D_pad, tn), lambda i, j: (0, j)),    # w1 chunk
            pl.BlockSpec((1, tn), lambda i, j: (0, j)),        # b1 chunk
            pl.BlockSpec((tn, D_pad), lambda i, j: (j, 0)),    # w2 chunk
            pl.BlockSpec((1, D_pad), lambda i, j: (0, 0)),     # b2
        ]
        out_specs = pl.BlockSpec((tm, D_pad), lambda i, j: (i, 0))
        scratch = [pltpu.VMEM((tm, D_pad), jnp.bfloat16)]      # LayerNorm output
        if not acc_in_out:
            scratch.append(pltpu.VMEM((tm, D_pad), jnp.float32))  # f32 accumulator
        dims_sem = ("parallel", "arbitrary")

    out2d = pl.pallas_call(
        kernel,
        out_shape=jax.ShapeDtypeStruct((T_pad, D_pad), out_dtype),
        grid_spec=pltpu.PrefetchScalarGridSpec(
            num_scalar_prefetch=0,
            grid=grid,
            in_specs=in_specs,
            out_specs=out_specs,
            scratch_shapes=scratch,
        ),
        compiler_params=pltpu.CompilerParams(
            dimension_semantics=dims_sem,
            vmem_limit_bytes=vmem_limit,
        ),
        cost_estimate=cost,
    )(x2d, ln_w, ln_b, w1, b1, w2, b2)

    return out2d[:T, :dim].reshape(B, N, dim)


def make_params(key, dim, hidden):
    """Deterministic synthetic parameters matching the PyTorch module shapes."""
    k1, k2, k3, k4 = jax.random.split(key, 4)
    return {
        # nn.LayerNorm(dim): weight=1, bias=0 (default init)
        "ln_w": jnp.ones((1, dim), jnp.float32),
        "ln_b": jnp.zeros((1, dim), jnp.float32),
        # nn.Linear(dim, hidden): torch weight is (hidden, dim); stored transposed here
        "w1": jax.random.normal(k1, (dim, hidden), jnp.float32) * 0.02,
        "b1": jax.random.normal(k2, (1, hidden), jnp.float32) * 0.02,
        # nn.Linear(hidden, dim)
        "w2": jax.random.normal(k3, (hidden, dim), jnp.float32) * 0.02,
        "b2": jax.random.normal(k4, (1, dim), jnp.float32) * 0.02,
    }


def feed_forward_ref(x, params, eps=1e-5):
    """Pure-JAX f32 reference for correctness checking."""
    mean = jnp.mean(x, axis=-1, keepdims=True)
    var = jnp.mean((x - mean) ** 2, axis=-1, keepdims=True)
    xn = (x - mean) * jax.lax.rsqrt(var + eps)
    y = xn * params["ln_w"][0] + params["ln_b"][0]
    h = y @ params["w1"] + params["b1"][0]
    h = jax.nn.gelu(h, approximate=False)
    return h @ params["w2"] + params["b2"][0]


if __name__ == "__main__":
    B, N, DIM, HIDDEN = 2, 8, 32, 64   # small shapes consistent with FeedForward(dim, hidden_dim)

    key = jax.random.PRNGKey(0)
    kx, kp = jax.random.split(key)
    x = jax.random.normal(kx, (B, N, DIM), jnp.float32)
    params = make_params(kp, DIM, HIDDEN)

    out = feed_forward(x, params)
    out = jax.block_until_ready(out)

    ref = feed_forward_ref(x, params)
    assert out.shape == (B, N, DIM)
    # bf16 activations/weights on the MXU (f32 accumulation) -> relaxed tolerance vs f32 reference.
    assert jnp.allclose(out, ref, atol=2e-2, rtol=5e-2), "mismatch vs reference"

    print("KERNEL_OK")
</pallas_src>

<mosaic_0001>
module attributes {stable_mosaic.version = 11 : i64} {
  func.func @_ffn_kernel_resident(%arg0: i32, %arg1: memref<16x128xbf16, #tpu.memory_space<vmem>>, %arg2: memref<1x128xf32, #tpu.memory_space<vmem>>, %arg3: memref<1x128xf32, #tpu.memory_space<vmem>>, %arg4: memref<128x128xbf16, #tpu.memory_space<vmem>>, %arg5: memref<1x128xf32, #tpu.memory_space<vmem>>, %arg6: memref<128x128xbf16, #tpu.memory_space<vmem>>, %arg7: memref<1x128xf32, #tpu.memory_space<vmem>>, %arg8: memref<16x128xf32, #tpu.memory_space<vmem>>) attributes {dimension_semantics = [#tpu.dimension_semantics<parallel>], iteration_bounds = array<i64: 1>, scalar_prefetch = 0 : i64, scratch_operands = 0 : i64, tpu.core_type = #tpu.core_type<tc>, window_params = [{transform_indices = @transform_0, window_bounds = array<i64: 16, 128>}, {pipeline_mode = #tpu.pipeline_mode<synchronous>, transform_indices = @transform_1, window_bounds = array<i64: 1, 128>}, {pipeline_mode = #tpu.pipeline_mode<synchronous>, transform_indices = @transform_2, window_bounds = array<i64: 1, 128>}, {pipeline_mode = #tpu.pipeline_mode<synchronous>, transform_indices = @transform_3, window_bounds = array<i64: 128, 128>}, {pipeline_mode = #tpu.pipeline_mode<synchronous>, transform_indices = @transform_4, window_bounds = array<i64: 1, 128>}, {pipeline_mode = #tpu.pipeline_mode<synchronous>, transform_indices = @transform_5, window_bounds = array<i64: 128, 128>}, {pipeline_mode = #tpu.pipeline_mode<synchronous>, transform_indices = @transform_6, window_bounds = array<i64: 1, 128>}, {transform_indices = @transform_7, window_bounds = array<i64: 16, 128>}]} {
    %c0 = arith.constant 0 : index
    %c0_0 = arith.constant 0 : index
    %0 = vector.load %arg1[%c0, %c0_0] : memref<16x128xbf16, #tpu.memory_space<vmem>>, vector<16x128xbf16>
    %1 = arith.extf %0 : vector<16x128xbf16> to vector<16x128xf32>
    %c0_1 = arith.constant 0 : index
    %c0_2 = arith.constant 0 : index
    %2 = vector.load %arg2[%c0_1, %c0_2] : memref<1x128xf32, #tpu.memory_space<vmem>>, vector<1x128xf32>
    %c0_3 = arith.constant 0 : index
    %c0_4 = arith.constant 0 : index
    %3 = vector.load %arg3[%c0_3, %c0_4] : memref<1x128xf32, #tpu.memory_space<vmem>>, vector<1x128xf32>
    %cst = arith.constant dense<0.000000e+00> : vector<16xf32>
    %4 = vector.multi_reduction <add>, %1, %cst [1] : vector<16x128xf32> to vector<16xf32>
    %5 = vector.shape_cast %4 : vector<16xf32> to vector<16x1xf32>
    %cst_5 = arith.constant 3.125000e-02 : f32
    %6 = vector.broadcast %cst_5 : f32 to vector<16x1xf32>
    %7 = arith.mulf %5, %6 : vector<16x1xf32>
    %8 = vector.broadcast %7 : vector<16x1xf32> to vector<16x128xf32>
    %9 = arith.subf %1, %8 : vector<16x128xf32>
    %10 = tpu.iota {dimensions = array<i32: 1>} : vector<16x128xi32>
    %c32_i32 = arith.constant 32 : i32
    %11 = vector.broadcast %c32_i32 : i32 to vector<16x128xi32>
    %12 = arith.cmpi slt, %10, %11 : vector<16x128xi32>
    %13 = arith.extui %12 : vector<16x128xi1> to vector<16x128xi32>
    %14 = arith.sitofp %13 : vector<16x128xi32> to vector<16x128xf32>
    %15 = arith.mulf %9, %14 : vector<16x128xf32>
    %16 = arith.mulf %15, %15 : vector<16x128xf32>
    %cst_6 = arith.constant dense<0.000000e+00> : vector<16xf32>
    %17 = vector.multi_reduction <add>, %16, %cst_6 [1] : vector<16x128xf32> to vector<16xf32>
    %18 = vector.shape_cast %17 : vector<16xf32> to vector<16x1xf32>
    %cst_7 = arith.constant 3.125000e-02 : f32
    %19 = vector.broadcast %cst_7 : f32 to vector<16x1xf32>
    %20 = arith.mulf %18, %19 : vector<16x1xf32>
    %cst_8 = arith.constant 9.99999974E-6 : f32
    %21 = vector.broadcast %cst_8 : f32 to vector<16x1xf32>
    %22 = arith.addf %20, %21 : vector<16x1xf32>
    %23 = math.rsqrt %22 : vector<16x1xf32>
    %24 = vector.broadcast %23 : vector<16x1xf32> to vector<16x128xf32>
    %25 = arith.mulf %15, %24 : vector<16x128xf32>
    %26 = vector.broadcast %2 : vector<1x128xf32> to vector<16x128xf32>
    %27 = arith.mulf %25, %26 : vector<16x128xf32>
    %28 = vector.broadcast %3 : vector<1x128xf32> to vector<16x128xf32>
    %29 = arith.addf %27, %28 : vector<16x128xf32>
    %30 = arith.truncf %29 : vector<16x128xf32> to vector<16x128xbf16>
    %c0_9 = arith.constant 0 : index
    %c0_10 = arith.constant 0 : index
    %31 = vector.load %arg4[%c0_9, %c0_10] : memref<128x128xbf16, #tpu.memory_space<vmem>>, vector<128x128xbf16>
    %cst_11 = arith.constant dense<0.000000e+00> : vector<16x128xf32>
    %32 = tpu.matmul %30, %31, %cst_11 {dimension_numbers = #tpu.dot_dimension_numbers<[1], [0], [0], [1], [0, 0, 1, 1], [], []>} : vector<16x128xbf16>, vector<128x128xbf16>, vector<16x128xf32> -> vector<16x128xf32>
    %c0_12 = arith.constant 0 : index
    %c0_13 = arith.constant 0 : index
    %33 = vector.load %arg5[%c0_12, %c0_13] : memref<1x128xf32, #tpu.memory_space<vmem>>, vector<1x128xf32>
    %34 = vector.broadcast %33 : vector<1x128xf32> to vector<16x128xf32>
    %35 = arith.addf %32, %34 : vector<16x128xf32>
    %cst_14 = arith.constant 5.000000e-01 : f32
    %36 = vector.broadcast %cst_14 : f32 to vector<16x128xf32>
    %37 = arith.mulf %36, %35 : vector<16x128xf32>
    %cst_15 = arith.constant 0.707106769 : f32
    %38 = vector.broadcast %cst_15 : f32 to vector<16x128xf32>
    %39 = arith.mulf %35, %38 : vector<16x128xf32>
    %40 = math.erf %39 : vector<16x128xf32>
    %cst_16 = arith.constant 1.000000e+00 : f32
    %41 = vector.broadcast %cst_16 : f32 to vector<16x128xf32>
    %42 = arith.addf %41, %40 : vector<16x128xf32>
    %43 = arith.mulf %37, %42 : vector<16x128xf32>
    %44 = arith.truncf %43 : vector<16x128xf32> to vector<16x128xbf16>
    %c0_17 = arith.constant 0 : index
    %c0_18 = arith.constant 0 : index
    %45 = vector.load %arg6[%c0_17, %c0_18] : memref<128x128xbf16, #tpu.memory_space<vmem>>, vector<128x128xbf16>
    %cst_19 = arith.constant dense<0.000000e+00> : vector<16x128xf32>
    %46 = tpu.matmul %44, %45, %cst_19 {dimension_numbers = #tpu.dot_dimension_numbers<[1], [0], [0], [1], [0, 0, 1, 1], [], []>} : vector<16x128xbf16>, vector<128x128xbf16>, vector<16x128xf32> -> vector<16x128xf32>
    %c0_20 = arith.constant 0 : index
    %c0_21 = arith.constant 0 : index
    %47 = vector.load %arg7[%c0_20, %c0_21] : memref<1x128xf32, #tpu.memory_space<vmem>>, vector<1x128xf32>
    %48 = vector.broadcast %47 : vector<1x128xf32> to vector<16x128xf32>
    %49 = arith.addf %46, %48 : vector<16x128xf32>
    %c0_22 = arith.constant 0 : index
    %c0_23 = arith.constant 0 : index
    %50 = vector.load %arg8[%c0_22, %c0_23] : memref<16x128xf32, #tpu.memory_space<vmem>>, vector<16x128xf32>
    tpu.vector_store %arg8[%c0_22, %c0_23], %49 {strides = array<i32>} : memref<16x128xf32, #tpu.memory_space<vmem>>, vector<16x128xf32>,
    return
  }
  func.func @transform_0(%arg0: i32) -> (i32, i32) {
    %c0_i32 = arith.constant 0 : i32
    %c0_i32_0 = arith.constant 0 : i32
    return %arg0, %c0_i32 : i32, i32
  }
  func.func @transform_1(%arg0: i32) -> (i32, i32) {
    %c0_i32 = arith.constant 0 : i32
    %c0_i32_0 = arith.constant 0 : i32
    %c0_i32_1 = arith.constant 0 : i32
    return %c0_i32, %c0_i32_0 : i32, i32
  }
  func.func @transform_2(%arg0: i32) -> (i32, i32) {
    %c0_i32 = arith.constant 0 : i32
    %c0_i32_0 = arith.constant 0 : i32
    %c0_i32_1 = arith.constant 0 : i32
    return %c0_i32, %c0_i32_0 : i32, i32
  }
  func.func @transform_3(%arg0: i32) -> (i32, i32) {
    %c0_i32 = arith.constant 0 : i32
    %c0_i32_0 = arith.constant 0 : i32
    %c0_i32_1 = arith.constant 0 : i32
    return %c0_i32, %c0_i32_0 : i32, i32
  }
  func.func @transform_4(%arg0: i32) -> (i32, i32) {
    %c0_i32 = arith.constant 0 : i32
    %c0_i32_0 = arith.constant 0 : i32
    %c0_i32_1 = arith.constant 0 : i32
    return %c0_i32, %c0_i32_0 : i32, i32
  }
  func.func @transform_5(%arg0: i32) -> (i32, i32) {
    %c0_i32 = arith.constant 0 : i32
    %c0_i32_0 = arith.constant 0 : i32
    %c0_i32_1 = arith.constant 0 : i32
    return %c0_i32, %c0_i32_0 : i32, i32
  }
  func.func @transform_6(%arg0: i32) -> (i32, i32) {
    %c0_i32 = arith.constant 0 : i32
    %c0_i32_0 = arith.constant 0 : i32
    %c0_i32_1 = arith.constant 0 : i32
    return %c0_i32, %c0_i32_0 : i32, i32
  }
  func.func @transform_7(%arg0: i32) -> (i32, i32) {
    %c0_i32 = arith.constant 0 : i32
    %c0_i32_0 = arith.constant 0 : i32
    return %arg0, %c0_i32 : i32, i32
  }
}

</mosaic_0001>

<bundles_post_ra>
// kernel: tpu_custom_call.1
= control target key start
LH: loop header
LB: loop body
LE: loop exit
PB: predicated region body
PF: predicated region fallthrough
CT: control target
= control target key end

     0   :  { %12 = vsyncpa [#allocation3], 0  ;;  %s757_s0 = inlined_call_operand.hbm [shape: bf16[16,128], index: 0, kind: input, shape index: {}]   ;;  %s758_s1 = inlined_call_operand.hbm [shape: f32[1,128], index: 1, kind: input, shape index: {}]   ;;  %s759_s2 = inlined_call_operand.vmem [shape: f32[1,128], index: 2, kind: input, shape index: {}]   ;;  %s760_s3 = inlined_call_operand.hbm [shape: bf16[128,128], index: 3, kind: input, shape index: {}]   ;;  %s761_s4 = inlined_call_operand.vmem [shape: f32[1,128], index: 4, kind: input, shape index: {}]   ;;  %s762_s5 = inlined_call_operand.hbm [shape: bf16[128,128], index: 5, kind: input, shape index: {}]   ;;  %s763_s6 = inlined_call_operand.vmem [shape: f32[1,128], index: 6, kind: input, shape index: {}]   ;;  %s764_s7 = inlined_call_operand.hbm [shape: f32[16,128], index: 7, kind: output, shape index: {}]  }
   0x1   :  { %13 = vsyncpa [#allocation6], 0 }
   0x2   :  { %14 = vsyncpa [#allocation9], 0  ;;  %s34_s26 = sshll.u32 %s758_s1, 4  ;;  %s35_s26 = int_to_ptr.hbm [resolvable:$true] %s34_s26 }
   0x3   :  { %15 = vsyncpa [#allocation4], 0  ;;  %s665_s27 = smov [#allocation5]   ;;  %s20_s8 = sshll.u32 %s757_s0, 4  ;;  %s21_s8 = int_to_ptr.hbm [resolvable:$true] %s20_s8 }
   0x4   :  { %s36_s28 = sshll.u32 %s665_s27, 4  ;;  %s666_s9 = smov [#allocation2]   ;;  %s37_s28 = int_to_ptr.vmem [resolvable:$true] %s36_s28 }
   0x5   :  { %39 = dma.hbm_to_vmem [thread:$0]  %s35_s26, 16, %s37_s28, [#allocation6]  }
   0x6   :  { %s22_s10 = sshll.u32 %s666_s9, 4  ;;  %s667_s11 = smov 64   ;;  %s23_s10 = int_to_ptr.vmem [resolvable:$true] %s22_s10 }
   0x7   :  { %s668_s12 = smov 4   ;;  %s46_s1 = sshll.u32 %s760_s3, 4  ;;  %s47_s1 = int_to_ptr.hbm [resolvable:$true] %s46_s1 }
   0x8   :  { %28 = dma.hbm_to_vmem [thread:$0]  %s21_s8, 128, %s23_s10, [#allocation3], %s667_s11, %s667_s11, %s668_s12  }
   0x9   :  { %s669_s15 = smov [#allocation7]   ;;  %s61_s0 = sshll.u32 %s762_s5, 4  ;;  %s62_s0 = int_to_ptr.hbm [resolvable:$true] %s61_s0 }
   0xa   :  { %s48_s16 = sshll.u32 %s669_s15, 4  ;;  %s670_s19 = smov [#allocation8]   ;;  %s49_s16 = int_to_ptr.vmem [resolvable:$true] %s48_s16 }
   0xb   :  { %54 = dma.hbm_to_vmem [thread:$0]  %s47_s1, 1024, %s49_s16, [#allocation6], %s667_s11, %s667_s11, %s668_s12  }
   0xc   :  { %s63_s20 = sshll.u32 %s670_s19, 4  ;;  %s64_s20 = int_to_ptr.vmem [resolvable:$true] %s63_s20 }
   0xd   :  { %69 = dma.hbm_to_vmem [thread:$0]  %s62_s0, 1024, %s64_s20, [#allocation9], %s667_s11, %s667_s11, %s668_s12  }
   0xe   :  { %657 = dma.done.wait [#allocation3], 128  }
   0xf   :  { %658 = vsyncadd [#allocation3], 4294967168 }
  0x10   :  { %659 = dma.done.wait [#allocation6], 1040  }
  0x11   :  { %660 = vsyncadd [#allocation6], 4294966256 }
  0x12   :  { %661 = dma.done.wait [#allocation9], 1024  }
  0x13   :  { %662 = vsyncadd [#allocation9], 4294966272  ;;  %v512_v0 = vld [vmem:[#allocation2] sm:$0xff]   ;;  %v102_v3 = vlaneseq  ;;  %v671_v7 = vmov 0.0   ;;  %v500_v19 = vld [vmem:[#allocation7 + $0x28] sm:$0xff]  ;;  %s672_s23 = smov [#allocation10]  }
  0x14   :  { %v513_v1 = vunpack.c.l.bf16 %v512_v0  ;;  %v514_v2 = vunpack.c.h.bf16 %v512_v0  ;;  %v502_v17 = vld [vmem:[#allocation7 + $0x38] sm:$0xff]  ;;  %v501_v18 = vld [vmem:[#allocation7 + $0x30] sm:$0xff]  ;;  %v499_v20 = vld [vmem:[#allocation7 + $0x20] sm:$0xff]  ;;  %s411_s24 = sshll.u32 %s672_s23, 4  ;;  %s413_s27 = sshll.u32 %s764_s7, 4  ;;  %s412_s24 = int_to_ptr.vmem [resolvable:$true] %s411_s24  ;;  %s414_s27 = int_to_ptr.hbm [resolvable:$true] %s413_s27 }
  0x15   :  { %v103_v4 = vand.u32 127, %v102_v3  ;;  %220 = vmatpush.bf16.msra.mxu0 %v502_v17  ;;  %v498_v21 = vld [vmem:[#allocation7 + $0x18] sm:$0xff]  ;;  %v497_v22 = vld [vmem:[#allocation7 + $0x10] sm:$0xff]  ;;  %v496_v23 = vld [vmem:[#allocation7 + $0x8] sm:$0xff]  ;;  %s673_s28 = smov 128   ;;  %s674_s29 = smov 8  }
  0x16   :  { %94 = vadd.xlane.f32.xlu0 %v513_v1  ;;  %v495_v25 = vld [vmem:[#allocation7] sm:$0xff]  ;;  %v525_v44 = vld [vmem:[#allocation5] ss:$0 sm:$0xff]  ;;  %v526_v49 = vld [vmem:[%s759_s2] ss:$0 sm:$0xff] }
  0x17   :  { %vm104_vm0 = vcmp.lt.s32.totalorder %v103_v4, 32  ;;  %v527_v54 = vld [vmem:[%s761_s4] ss:$0 sm:$0xff]  ;;  %v510_v55 = vld [vmem:[#allocation8 + $0x38] sm:$0xff]  ;;  %v508_v61 = vld [vmem:[#allocation8 + $0x28] sm:$0xff] }
  0x18   :  { %v428_v8 = vsel %vm104_vm0, 1.0, %v671_v7  ;;  %391 = vmatpush.bf16.msra.mxu1 %v510_v55  ;;  %v509_v59 = vld [vmem:[#allocation8 + $0x30] sm:$0xff] }
  0x19   :  { %221 = vmatpush.bf16.msra.mxu0 %v501_v18 }
  0x1c   :  { %392 = vmatpush.bf16.msra.mxu1 %v509_v59 }
  0x1d   :  { %222 = vmatpush.bf16.msra.mxu0 %v500_v19 }
  0x1e   :  { %96 = vadd.xlane.f32.xlu0 %v514_v2 }
  0x20   :  { %393 = vmatpush.bf16.msra.mxu1 %v508_v61 }
  0x21   :  { %223 = vmatpush.bf16.msra.mxu0 %v499_v20 }
  0x25   :  { %224 = vmatpush.bf16.msra.mxu0 %v498_v21 }
  0x29   :  { %225 = vmatpush.bf16.msra.mxu0 %v497_v22  ;;  %v504_v22 = vld [vmem:[#allocation8 + $0x8] sm:$0xff] }
  0x2d   :  { %226 = vmatpush.bf16.msra.mxu0 %v496_v23 }
  0x31   :  { %227 = vmatpush.bf16.msra.mxu0 %v495_v25 }
  0x89   :  { %v95_v5 = vpop.xlane.xlu0 %94 }
  0x8a   :  { %v98_v6 = vmul.f32 0.03125, %v95_v5 }
  0x8c   :  { %v100_v9 = vsub.f32 %v513_v1, %v98_v6 }
  0x8e   :  { %v107_v10 = vmul.f32 %v428_v8, %v100_v9 }
  0x90   :  { %v109_v11 = vmul.f32 %v107_v10, %v107_v10 }
  0x91   :  { %v97_v12 = vpop.xlane.xlu0 %96 }
  0x92   :  { %v99_v13 = vmul.f32 0.03125, %v97_v12  ;;  %111 = vadd.xlane.f32.xlu1 %v109_v11 }
  0x94   :  { %v101_v14 = vsub.f32 %v514_v2, %v99_v13  ;;  %v507_v2 = vld [vmem:[#allocation8 + $0x20] sm:$0xff] }
  0x95   :  { %394 = vmatpush.bf16.msra.mxu1 %v507_v2 }
  0x96   :  { %v108_v15 = vmul.f32 %v428_v8, %v101_v14  ;;  %v506_v8 = vld [vmem:[#allocation8 + $0x18] sm:$0xff]  ;;  %v505_v14 = vld [vmem:[#allocation8 + $0x10] sm:$0xff] }
  0x98   :  { %v110_v16 = vmul.f32 %v108_v15, %v108_v15 }
  0x99   :  { %395 = vmatpush.bf16.msra.mxu1 %v506_v8 }
  0x9a   :  { %113 = vadd.xlane.f32.xlu1 %v110_v16 }
  0x9d   :  { %396 = vmatpush.bf16.msra.mxu1 %v505_v14 }
  0xa1   :  { %397 = vmatpush.bf16.msra.mxu1 %v504_v22 }
 0x105   :  { %v112_v24 = vpop.xlane.xlu1 %111 }
 0x106   :  { %v115_v26 = vmul.f32 0.03125, %v112_v24 }
 0x108   :  { %v117_v27 = vadd.f32 1e-05, %v115_v26 }
 0x10a   :  { %529 = vrsqrt.f32 %v117_v27  ;;  %vm125_vm2 = vweird.f32 %v117_v27 }
 0x10d   :  { %v114_v28 = vpop.xlane.xlu1 %113 }
 0x10e   :  { %v116_v29 = vmul.f32 0.03125, %v114_v28 }
 0x110   :  { %v530_v30 = vpop.eup %529  ;;  %v118_v31 = vadd.f32 1e-05, %v116_v29  ;;  %v503_v29 = vld [vmem:[#allocation8] sm:$0xff] }
 0x111   :  { %v120_v32 = vmul.f32 %v530_v30, %v117_v27  ;;  %vm126_vm1 = vweird.f32 %v530_v30  ;;  %398 = vmatpush.bf16.msra.mxu1 %v503_v29 }
 0x112   :  { %531 = vrsqrt.f32 %v118_v31  ;;  %vm127_vm3 = vmor %vm125_vm2, %vm126_vm1  ;;  %vm135_vm5 = vweird.f32 %v118_v31 }
 0x113   :  { %v121_v33 = vmul.f32 %v530_v30, %v120_v32 }
 0x115   :  { %v122_v34 = vmul.f32 0.5, %v121_v33 }
 0x117   :  { %v123_v35 = vsub.f32 1.5, %v122_v34 }
 0x118   :  { %v532_v36 = vpop.eup %531 }
 0x119   :  { %v124_v37 = vmul.f32 %v530_v30, %v123_v35  ;;  %v130_v38 = vmul.f32 %v532_v36, %v118_v31  ;;  %vm136_vm4 = vweird.f32 %v532_v36 }
 0x11a   :  { %vm137_vm6 = vmor %vm135_vm5, %vm136_vm4 }
 0x11b   :  { %v131_v39 = vmul.f32 %v532_v36, %v130_v38  ;;  %v128_v41 = vsel %vm127_vm3, %v530_v30, %v124_v37 }
 0x11c   :  { %v139_v43 = vmul.f32 %v128_v41, %v107_v10 }
 0x11d   :  { %v132_v40 = vmul.f32 0.5, %v131_v39 }
 0x11e   :  { %v144_v48 = vmul.f32 %v525_v44, %v139_v43 }
 0x11f   :  { %v133_v42 = vsub.f32 1.5, %v132_v40 }
 0x120   :  { %v149_v51 = vadd.f32 %v526_v49, %v144_v48 }
 0x121   :  { %v134_v45 = vmul.f32 %v532_v36, %v133_v42 }
 0x123   :  { %v138_v46 = vsel %vm137_vm6, %v532_v36, %v134_v45 }
 0x124   :  { %v140_v47 = vmul.f32 %v138_v46, %v108_v15 }
 0x126   :  { %v145_v50 = vmul.f32 %v525_v44, %v140_v47 }
 0x128   :  { %v150_v52 = vadd.f32 %v526_v49, %v145_v50 }
 0x12a   :  { %v151_v53 = vpack.c.bf16 %v150_v52, %v149_v51 }
 0x12c   :  { %228 = vmatmul.bf16.vlgmr.msra.gmra.mxu0 %v151_v53 }
 0x1a9   :  { %v229_v56 = vpop.f32.mrf.mxu0 }
 0x1aa   :  { %v733_v57 = vadd.f32 %v527_v54, %v229_v56 }
 0x1ac   :  { %v736_v58 = vmul.f32 0.70710677, %v733_v57 }
 0x1ae   :  { %v238_v60 = vmul.f32 %v736_v58, %v736_v58 }
 0x1b0   :  { %v239_v62 = vmin.f32 %v238_v60, 16.0 }
 0x1b1   :  { %v231_v63 = vpop.f32.mrf.mxu0 }
 0x1b2   :  { %v240_v0 = vmul.f32 2.1237322e-06, %v239_v62  ;;  %v740_v1 = vadd.f32 %v527_v54, %v231_v63  ;;  %v251_v3 = vmul.f32 3.8918573e-05, %v239_v62 }
 0x1b4   :  { %v241_v4 = vadd.f32 0.00028619796, %v240_v0  ;;  %v743_v5 = vmul.f32 0.70710677, %v740_v1  ;;  %v252_v6 = vadd.f32 0.001143296, %v251_v3 }
 0x1b6   :  { %v278_v7 = vmul.f32 %v743_v5, %v743_v5  ;;  %v242_v9 = vmul.f32 %v241_v4, %v239_v62  ;;  %v253_v10 = vmul.f32 %v252_v6, %v239_v62 }
 0x1b8   :  { %v279_v11 = vmin.f32 %v278_v7, 16.0  ;;  %v254_v12 = vadd.f32 0.014752088, %v253_v10  ;;  %v243_v16 = vadd.f32 0.0036580483, %v242_v9 }
 0x1ba   :  { %v280_v13 = vmul.f32 2.1237322e-06, %v279_v11  ;;  %v291_v15 = vmul.f32 3.8918573e-05, %v279_v11  ;;  %v255_v17 = vmul.f32 %v254_v12, %v239_v62  ;;  %v244_v24 = vmul.f32 %v243_v16, %v239_v62 }
 0x1bb   :  { %v235_v16 = vmul.f32 0.5, %v740_v1 }
 0x1bc   :  { %v281_v18 = vadd.f32 0.00028619796, %v280_v13  ;;  %v292_v19 = vadd.f32 0.001143296, %v291_v15  ;;  %v256_v20 = vadd.f32 0.112945676, %v255_v17 }
 0x1bd   :  { %v245_v31 = vadd.f32 0.05243302, %v244_v24  ;;  %v234_v15 = vmul.f32 0.5, %v733_v57 }
 0x1be   :  { %v282_v21 = vmul.f32 %v281_v18, %v279_v11  ;;  %v293_v23 = vmul.f32 %v292_v19, %v279_v11  ;;  %v257_v25 = vmul.f32 %v256_v20, %v239_v62 }
 0x1bf   :  { %v246_v37 = vmul.f32 %v245_v31, %v239_v62 }
 0x1c0   :  { %v283_v26 = vadd.f32 0.0036580483, %v282_v21  ;;  %v294_v27 = vadd.f32 0.014752088, %v293_v23  ;;  %v258_v28 = vadd.f32 0.4994258, %v257_v25 }
 0x1c1   :  { %v247_v41 = vadd.f32 0.18741608, %v246_v37 }
 0x1c2   :  { %v295_v30 = vmul.f32 %v294_v27, %v279_v11  ;;  %v259_v32 = vmul.f32 %v258_v28, %v239_v62  ;;  %v284_v33 = vmul.f32 %v283_v26, %v279_v11 }
 0x1c3   :  { %v248_v46 = vmul.f32 %v247_v41, %v239_v62 }
 0x1c4   :  { %v296_v34 = vadd.f32 0.112945676, %v295_v30  ;;  %v260_v35 = vadd.f32 1.0, %v259_v32  ;;  %v285_v38 = vadd.f32 0.05243302, %v284_v33 }
 0x1c5   :  { %v249_v52 = vadd.f32 1.1283791, %v248_v46 }
 0x1c6   :  { %v297_v36 = vmul.f32 %v296_v34, %v279_v11  ;;  %533 = vrcp.f32 %v260_v35  ;;  %v286_v42 = vmul.f32 %v285_v38, %v279_v11  ;;  %v272_v49 = vand.u32 2147483648, %v260_v35 }
 0x1c7   :  { %v270_v51 = vand.u32 2147483647, %v260_v35  ;;  %vm266_vm8 = vweird.f32 %v260_v35  ;;  %v250_v61 = vmul.f32 %v249_v52, %v736_v58 }
 0x1c8   :  { %v298_v39 = vadd.f32 0.4994258, %v297_v36  ;;  %v287_v47 = vadd.f32 0.18741608, %v286_v42  ;;  %v273_v56 = vor.u32 1.1754944e-38, %v272_v49 }
 0x1c9   :  { %vm271_vm10 = vcmp.eq.f32.partialorder %v270_v51, 8.507059e+37 }
 0x1ca   :  { %v299_v40 = vmul.f32 %v298_v39, %v279_v11  ;;  %v288_v54 = vmul.f32 %v287_v47, %v279_v11 }
 0x1cc   :  { %v300_v43 = vadd.f32 1.0, %v299_v40  ;;  %v534_v44 = vpop.eup %533  ;;  %v289_v0 = vadd.f32 1.1283791, %v288_v54 }
 0x1cd   :  { %v262_v45 = vmul.f32 %v534_v44, %v260_v35  ;;  %vm267_vm7 = vweird.f32 %v534_v44 }
 0x1ce   :  { %535 = vrcp.f32 %v300_v43  ;;  %vm268_vm9 = vmor %vm266_vm8, %vm267_vm7  ;;  %v312_v2 = vand.u32 2147483648, %v300_v43  ;;  %v310_v6 = vand.u32 2147483647, %v300_v43  ;;  %vm306_vm12 = vweird.f32 %v300_v43 }
 0x1cf   :  { %v263_v48 = vsub.f32 1.0, %v262_v45  ;;  %v290_v9 = vmul.f32 %v289_v0, %v743_v5  ;;  %v528_v5 = vld [vmem:[%s763_s6] ss:$0 sm:$0xff] }
 0x1d0   :  { %v313_v8 = vor.u32 1.1754944e-38, %v312_v2  ;;  %vm311_vm14 = vcmp.eq.f32.partialorder %v310_v6, 8.507059e+37 }
 0x1d1   :  { %v264_v50 = vmul.f32 %v534_v44, %v263_v48 }
 0x1d3   :  { %v265_v55 = vadd.f32 %v534_v44, %v264_v50 }
 0x1d4   :  { %v536_v53 = vpop.eup %535 }
 0x1d5   :  { %v302_v59 = vmul.f32 %v536_v53, %v300_v43  ;;  %v269_v60 = vsel %vm268_vm9, %v534_v44, %v265_v55  ;;  %vm307_vm11 = vweird.f32 %v536_v53 }
 0x1d6   :  { %v274_v63 = vsel %vm271_vm10, %v273_v56, %v269_v60  ;;  %vm308_vm13 = vmor %vm306_vm12, %vm307_vm11 }
 0x1d7   :  { %v303_v62 = vsub.f32 1.0, %v302_v59  ;;  %v275_v3 = vmul.f32 %v274_v63, %v250_v61 }
 0x1d9   :  { %v304_v4 = vmul.f32 %v536_v53, %v303_v62  ;;  %v461_v10 = vclamps-f32 %v275_v3, 1.0 }
 0x1db   :  { %v305_v7 = vadd.f32 %v536_v53, %v304_v4  ;;  %v318_v14 = vadd.f32 1.0, %v461_v10 }
 0x1dd   :  { %v309_v11 = vsel %vm308_vm13, %v536_v53, %v305_v7  ;;  %v320_v18 = vmul.f32 %v318_v14, %v234_v15 }
 0x1de   :  { %v314_v12 = vsel %vm311_vm14, %v313_v8, %v309_v11 }
 0x1df   :  { %v315_v13 = vmul.f32 %v314_v12, %v290_v9 }
 0x1e1   :  { %v462_v58 = vclamps-f32 %v315_v13, 1.0 }
 0x1e3   :  { %v319_v17 = vadd.f32 1.0, %v462_v58 }
 0x1e5   :  { %v321_v19 = vmul.f32 %v319_v17, %v235_v16 }
 0x1e7   :  { %v322_v20 = vpack.c.bf16 %v321_v19, %v320_v18 }
 0x1e9   :  { %399 = vmatmul.bf16.vlgmr.msra.gmra.mxu1 %v322_v20 }
 0x266   :  { %v400_v21 = vpop.f32.mrf.mxu1 }
 0x267   :  { %v401_v22 = vadd.f32 %v528_v5, %v400_v21 }
 0x269   :  { %405 = vst [vmem:[#allocation10] sm:$0xff] %v401_v22 }
 0x26e   :  { %v402_v57 = vpop.f32.mrf.mxu1 }
 0x26f   :  { %v403_v1 = vadd.f32 %v528_v5, %v402_v57 }
 0x271   :  { %406 = vst [vmem:[#allocation10 + $0x8] sm:$0xff] %v403_v1 }
 0x272   :  { %419 = dma.vmem_to_hbm [thread:$0]  %s412_s24, 256, %s414_s27, [#allocation4], %s673_s28, %s673_s28, %s674_s29  }
 0x273   :  { %663 = dma.done.wait [#allocation4], 256  }
 0x274   :  { %664 = vsyncadd [#allocation4], 4294967040 }
 0x275   :  { %424 = vsyncpa [#allocation3], 1 }
 0x276   :  { %425 = vsyncpa [#allocation6], 1 }
 0x277   :  { %426 = vsyncpa [#allocation9], 1 }
 0x278   :  { %427 = vsyncpa [#allocation4], 1 }

</bundles_post_ra>
